<compile_context>
chip_gen: v5e
topology: v5e:2x2
jax: 0.10.0
libtpu: 0.0.40
codegen_flags: <defaults>
</compile_context>

<pallas_src>
import jax
import jax.numpy as jnp
from jax.experimental import pallas as pl
from jax.experimental.pallas import tpu as pltpu

_SUBLANE = 8      # f32 sublane tiling unit (second-to-last block dim)
_TB_MAX = 2048    # max batch-tile rows


def _round_up(n, m):
    return ((n + m - 1) // m) * m


def _ae_kernel(
    x_ref,
    # encoder trunk (n_hids=2) + encode head
    ew1_ref, eb1_ref, ew2_ref, eb2_ref, ewz_ref, ebz_ref,
    # decoder trunk (n_hids=2) + decode head
    dw1_ref, db1_ref, dw2_ref, db2_ref, dwo_ref, dbo_ref,
    # outputs
    latent_ref, recon_ref,
):
    x = x_ref[...]

    # ---- encoder trunk (ReLU after each hidden layer) ----
    h = jnp.dot(x, ew1_ref[...], preferred_element_type=jnp.float32) + eb1_ref[...]
    h = jnp.maximum(h, 0.0)
    h = jnp.dot(h, ew2_ref[...], preferred_element_type=jnp.float32) + eb2_ref[...]
    h = jnp.maximum(h, 0.0)
    # ---- encode head (no activation) ----
    z = jnp.dot(h, ewz_ref[...], preferred_element_type=jnp.float32) + ebz_ref[...]
    latent_ref[...] = z.astype(latent_ref.dtype)

    # ---- decoder trunk ----
    d = jnp.dot(z, dw1_ref[...], preferred_element_type=jnp.float32) + db1_ref[...]
    d = jnp.maximum(d, 0.0)
    d = jnp.dot(d, dw2_ref[...], preferred_element_type=jnp.float32) + db2_ref[...]
    d = jnp.maximum(d, 0.0)
    # ---- decode head (no activation) ----
    r = jnp.dot(d, dwo_ref[...], preferred_element_type=jnp.float32) + dbo_ref[...]
    recon_ref[...] = r.astype(recon_ref.dtype)


@jax.jit
def mlp_autoencoder_forward(x, params):
    """Returns (latent_code, reconstruct) exactly like MlpAutoEncoder.forward."""
    batch, goal_dim = x.shape
    hid = params["ew1"].shape[1]
    embed_size = params["ewz"].shape[1]

    # Batch tiling: pick n_tiles first so that
    #  * tiles never exceed _TB_MAX rows,
    #  * there are >= 2 tiles whenever the batch allows (keeps both v7x
    #    TensorCores busy on the "parallel" batch axis),
    #  * batch padding stays small (tb is derived from n_tiles, not fixed).
    n_tiles = max(pl.cdiv(batch, _TB_MAX), 2 if batch > _SUBLANE else 1)
    tb = _round_up(pl.cdiv(batch, n_tiles), _SUBLANE)
    pb = n_tiles * tb

    x = x.astype(jnp.float32)
    xp = x if pb == batch else jnp.pad(x, ((0, pb - batch), (0, 0)))

    args = (
        xp,
        params["ew1"], params["eb1"], params["ew2"], params["eb2"],
        params["ewz"], params["ebz"],
        params["dw1"], params["db1"], params["dw2"], params["db2"],
        params["dwo"], params["dbo"],
    )

    def row_spec(cols):
        # batch-tiled operand/output: tile i covers rows [i*tb, (i+1)*tb).
        # Last block dim == full array extent, so no lane padding is required.
        return pl.BlockSpec((tb, cols), lambda i: (i, 0))

    def const_spec(a):
        # weights/biases: full-extent block, same block every grid step
        # -> stay VMEM-resident (no re-DMA across grid iterations).
        return pl.BlockSpec(a.shape, lambda i: (0, 0))

    in_specs = [row_spec(goal_dim)] + [const_spec(a) for a in args[1:]]
    out_specs = (row_spec(embed_size), row_spec(goal_dim))

    # True (unpadded) cost: guides XLA scheduling around the custom call.
    flops = 2 * batch * (
        goal_dim * hid + hid * hid + hid * embed_size     # encoder
        + embed_size * hid + hid * hid + hid * goal_dim)  # decoder
    bytes_accessed = 4 * (
        batch * goal_dim                       # x in
        + batch * embed_size + batch * goal_dim  # latent + recon out
        + sum(int(a.size) for a in args[1:]))    # weights/biases

    latent_p, recon_p = pl.pallas_call(
        _ae_kernel,
        out_shape=(
            jax.ShapeDtypeStruct((pb, embed_size), jnp.float32),
            jax.ShapeDtypeStruct((pb, goal_dim), jnp.float32),
        ),
        grid=(n_tiles,),
        in_specs=in_specs,
        out_specs=out_specs,
        compiler_params=pltpu.CompilerParams(
            dimension_semantics=("parallel",),  # shard batch tiles across v7x's 2 TCs
        ),
        cost_estimate=pl.CostEstimate(
            flops=flops, transcendentals=0, bytes_accessed=bytes_accessed),
    )(*args)

    if pb == batch:
        return latent_p, recon_p
    # Padded batch rows produce bias-only garbage; strip them.
    return latent_p[:batch], recon_p[:batch]


def init_params(key, goal_dim, embed_size, hid, dtype=jnp.float32):
    """Deterministic synthetic parameter init (same shapes as the torch module,
    with weights pre-transposed to (in_dim, out_dim))."""
    def linear(k, fan_in, fan_out):
        kw, kb = jax.random.split(k)
        bound = 1.0 / jnp.sqrt(fan_in)
        w = jax.random.uniform(kw, (fan_in, fan_out), dtype, -bound, bound)
        b = jax.random.uniform(kb, (1, fan_out), dtype, -bound, bound)
        return w, b

    keys = jax.random.split(key, 6)
    p = {}
    # encoder: goal -> hid -> hid (ReLU after each), then hid -> embed (no act)
    p["ew1"], p["eb1"] = linear(keys[0], goal_dim, hid)
    p["ew2"], p["eb2"] = linear(keys[1], hid, hid)
    p["ewz"], p["ebz"] = linear(keys[2], hid, embed_size)
    # decoder: embed -> hid -> hid (ReLU after each), then hid -> goal (no act)
    p["dw1"], p["db1"] = linear(keys[3], embed_size, hid)
    p["dw2"], p["db2"] = linear(keys[4], hid, hid)
    p["dwo"], p["dbo"] = linear(keys[5], hid, goal_dim)
    return p


def _reference(x, p):
    """Pure-JAX reference of the same forward for a sanity check."""
    h = jnp.maximum(x @ p["ew1"] + p["eb1"], 0.0)
    h = jnp.maximum(h @ p["ew2"] + p["eb2"], 0.0)
    z = h @ p["ewz"] + p["ebz"]
    d = jnp.maximum(z @ p["dw1"] + p["db1"], 0.0)
    d = jnp.maximum(d @ p["dw2"] + p["db2"], 0.0)
    r = d @ p["dwo"] + p["dbo"]
    return z, r


if __name__ == "__main__":
    # Shapes implied by the module: env_params['goal']=16, args.embed_size=8,
    # args.ae_hid_size=32, args.ae_n_hids=2, args.activ=ReLU.
    goal_dim, embed_size, hid = 16, 8, 32

    key = jax.random.PRNGKey(0)
    kx, kp, kx2 = jax.random.split(key, 3)
    params = init_params(kp, goal_dim, embed_size, hid)

    # Small batch (single tile).
    batch = 8
    x = jax.random.normal(kx, (batch, goal_dim), jnp.float32)
    latent, recon = mlp_autoencoder_forward(x, params)
    jax.block_until_ready((latent, recon))

    z_ref, r_ref = _reference(x, params)
    assert latent.shape == (batch, embed_size)
    assert recon.shape == (batch, goal_dim)
    assert jnp.allclose(latent, z_ref, atol=1e-5, rtol=1e-5)
    assert jnp.allclose(recon, r_ref, atol=1e-5, rtol=1e-5)

    # Larger, non-multiple-of-tile batch: exercises the 2-tile grid path
    # (both v7x TensorCores) and the batch-padding/slice path.
    batch2 = 1000
    x2 = jax.random.normal(kx2, (batch2, goal_dim), jnp.float32)
    latent2, recon2 = mlp_autoencoder_forward(x2, params)
    jax.block_until_ready((latent2, recon2))
    z2_ref, r2_ref = _reference(x2, params)
    assert latent2.shape == (batch2, embed_size)
    assert recon2.shape == (batch2, goal_dim)
    assert jnp.allclose(latent2, z2_ref, atol=1e-5, rtol=1e-5)
    assert jnp.allclose(recon2, r2_ref, atol=1e-5, rtol=1e-5)

    print("KERNEL_OK")
</pallas_src>

<mosaic_0001>
module attributes {stable_mosaic.version = 11 : i64} {
  func.func @_ae_kernel(%arg0: i32, %arg1: memref<8x16xf32, #tpu.memory_space<vmem>>, %arg2: memref<16x32xf32, #tpu.memory_space<vmem>>, %arg3: memref<1x32xf32, #tpu.memory_space<vmem>>, %arg4: memref<32x32xf32, #tpu.memory_space<vmem>>, %arg5: memref<1x32xf32, #tpu.memory_space<vmem>>, %arg6: memref<32x8xf32, #tpu.memory_space<vmem>>, %arg7: memref<1x8xf32, #tpu.memory_space<vmem>>, %arg8: memref<8x32xf32, #tpu.memory_space<vmem>>, %arg9: memref<1x32xf32, #tpu.memory_space<vmem>>, %arg10: memref<32x32xf32, #tpu.memory_space<vmem>>, %arg11: memref<1x32xf32, #tpu.memory_space<vmem>>, %arg12: memref<32x16xf32, #tpu.memory_space<vmem>>, %arg13: memref<1x16xf32, #tpu.memory_space<vmem>>, %arg14: memref<8x8xf32, #tpu.memory_space<vmem>>, %arg15: memref<8x16xf32, #tpu.memory_space<vmem>>) attributes {dimension_semantics = [#tpu.dimension_semantics<parallel>], iteration_bounds = array<i64: 1>, scalar_prefetch = 0 : i64, scratch_operands = 0 : i64, tpu.core_type = #tpu.core_type<tc>, window_params = [{transform_indices = @transform_0, window_bounds = array<i64: 8, 16>}, {pipeline_mode = #tpu.pipeline_mode<synchronous>, transform_indices = @transform_1, window_bounds = array<i64: 16, 32>}, {pipeline_mode = #tpu.pipeline_mode<synchronous>, transform_indices = @transform_2, window_bounds = array<i64: 1, 32>}, {pipeline_mode = #tpu.pipeline_mode<synchronous>, transform_indices = @transform_3, window_bounds = array<i64: 32, 32>}, {pipeline_mode = #tpu.pipeline_mode<synchronous>, transform_indices = @transform_4, window_bounds = array<i64: 1, 32>}, {pipeline_mode = #tpu.pipeline_mode<synchronous>, transform_indices = @transform_5, window_bounds = array<i64: 32, 8>}, {pipeline_mode = #tpu.pipeline_mode<synchronous>, transform_indices = @transform_6, window_bounds = array<i64: 1, 8>}, {pipeline_mode = #tpu.pipeline_mode<synchronous>, transform_indices = @transform_7, window_bounds = array<i64: 8, 32>}, {pipeline_mode = #tpu.pipeline_mode<synchronous>, transform_indices = @transform_8, window_bounds = array<i64: 1, 32>}, {pipeline_mode = #tpu.pipeline_mode<synchronous>, transform_indices = @transform_9, window_bounds = array<i64: 32, 32>}, {pipeline_mode = #tpu.pipeline_mode<synchronous>, transform_indices = @transform_10, window_bounds = array<i64: 1, 32>}, {pipeline_mode = #tpu.pipeline_mode<synchronous>, transform_indices = @transform_11, window_bounds = array<i64: 32, 16>}, {pipeline_mode = #tpu.pipeline_mode<synchronous>, transform_indices = @transform_12, window_bounds = array<i64: 1, 16>}, {transform_indices = @transform_13, window_bounds = array<i64: 8, 8>}, {transform_indices = @transform_14, window_bounds = array<i64: 8, 16>}]} {
    %c0 = arith.constant 0 : index
    %c0_0 = arith.constant 0 : index
    %0 = vector.load %arg1[%c0, %c0_0] : memref<8x16xf32, #tpu.memory_space<vmem>>, vector<8x16xf32>
    %c0_1 = arith.constant 0 : index
    %c0_2 = arith.constant 0 : index
    %1 = vector.load %arg2[%c0_1, %c0_2] : memref<16x32xf32, #tpu.memory_space<vmem>>, vector<16x32xf32>
    %cst = arith.constant dense<0.000000e+00> : vector<8x32xf32>
    %2 = tpu.matmul %0, %1, %cst {dimension_numbers = #tpu.dot_dimension_numbers<[1], [0], [0], [1], [0, 0, 1, 1], [], []>} : vector<8x16xf32>, vector<16x32xf32>, vector<8x32xf32> -> vector<8x32xf32>
    %c0_3 = arith.constant 0 : index
    %c0_4 = arith.constant 0 : index
    %3 = vector.load %arg3[%c0_3, %c0_4] : memref<1x32xf32, #tpu.memory_space<vmem>>, vector<1x32xf32>
    %4 = vector.broadcast %3 : vector<1x32xf32> to vector<8x32xf32>
    %5 = arith.addf %2, %4 : vector<8x32xf32>
    %cst_5 = arith.constant 0.000000e+00 : f32
    %6 = vector.broadcast %cst_5 : f32 to vector<8x32xf32>
    %7 = arith.maximumf %5, %6 : vector<8x32xf32>
    %c0_6 = arith.constant 0 : index
    %c0_7 = arith.constant 0 : index
    %8 = vector.load %arg4[%c0_6, %c0_7] : memref<32x32xf32, #tpu.memory_space<vmem>>, vector<32x32xf32>
    %cst_8 = arith.constant dense<0.000000e+00> : vector<8x32xf32>
    %9 = tpu.matmul %7, %8, %cst_8 {dimension_numbers = #tpu.dot_dimension_numbers<[1], [0], [0], [1], [0, 0, 1, 1], [], []>} : vector<8x32xf32>, vector<32x32xf32>, vector<8x32xf32> -> vector<8x32xf32>
    %c0_9 = arith.constant 0 : index
    %c0_10 = arith.constant 0 : index
    %10 = vector.load %arg5[%c0_9, %c0_10] : memref<1x32xf32, #tpu.memory_space<vmem>>, vector<1x32xf32>
    %11 = vector.broadcast %10 : vector<1x32xf32> to vector<8x32xf32>
    %12 = arith.addf %9, %11 : vector<8x32xf32>
    %cst_11 = arith.constant 0.000000e+00 : f32
    %13 = vector.broadcast %cst_11 : f32 to vector<8x32xf32>
    %14 = arith.maximumf %12, %13 : vector<8x32xf32>
    %c0_12 = arith.constant 0 : index
    %c0_13 = arith.constant 0 : index
    %15 = vector.load %arg6[%c0_12, %c0_13] : memref<32x8xf32, #tpu.memory_space<vmem>>, vector<32x8xf32>
    %cst_14 = arith.constant dense<0.000000e+00> : vector<8x8xf32>
    %16 = tpu.matmul %14, %15, %cst_14 {dimension_numbers = #tpu.dot_dimension_numbers<[1], [0], [0], [1], [0, 0, 1, 1], [], []>} : vector<8x32xf32>, vector<32x8xf32>, vector<8x8xf32> -> vector<8x8xf32>
    %c0_15 = arith.constant 0 : index
    %c0_16 = arith.constant 0 : index
    %17 = vector.load %arg7[%c0_15, %c0_16] : memref<1x8xf32, #tpu.memory_space<vmem>>, vector<1x8xf32>
    %18 = vector.broadcast %17 : vector<1x8xf32> to vector<8x8xf32>
    %19 = arith.addf %16, %18 : vector<8x8xf32>
    %c0_17 = arith.constant 0 : index
    %c0_18 = arith.constant 0 : index
    %20 = vector.load %arg14[%c0_17, %c0_18] : memref<8x8xf32, #tpu.memory_space<vmem>>, vector<8x8xf32>
    tpu.vector_store %arg14[%c0_17, %c0_18], %19 {strides = array<i32>} : memref<8x8xf32, #tpu.memory_space<vmem>>, vector<8x8xf32>,
    %c0_19 = arith.constant 0 : index
    %c0_20 = arith.constant 0 : index
    %21 = vector.load %arg8[%c0_19, %c0_20] : memref<8x32xf32, #tpu.memory_space<vmem>>, vector<8x32xf32>
    %cst_21 = arith.constant dense<0.000000e+00> : vector<8x32xf32>
    %22 = tpu.matmul %19, %21, %cst_21 {dimension_numbers = #tpu.dot_dimension_numbers<[1], [0], [0], [1], [0, 0, 1, 1], [], []>} : vector<8x8xf32>, vector<8x32xf32>, vector<8x32xf32> -> vector<8x32xf32>
    %c0_22 = arith.constant 0 : index
    %c0_23 = arith.constant 0 : index
    %23 = vector.load %arg9[%c0_22, %c0_23] : memref<1x32xf32, #tpu.memory_space<vmem>>, vector<1x32xf32>
    %24 = vector.broadcast %23 : vector<1x32xf32> to vector<8x32xf32>
    %25 = arith.addf %22, %24 : vector<8x32xf32>
    %cst_24 = arith.constant 0.000000e+00 : f32
    %26 = vector.broadcast %cst_24 : f32 to vector<8x32xf32>
    %27 = arith.maximumf %25, %26 : vector<8x32xf32>
    %c0_25 = arith.constant 0 : index
    %c0_26 = arith.constant 0 : index
    %28 = vector.load %arg10[%c0_25, %c0_26] : memref<32x32xf32, #tpu.memory_space<vmem>>, vector<32x32xf32>
    %cst_27 = arith.constant dense<0.000000e+00> : vector<8x32xf32>
    %29 = tpu.matmul %27, %28, %cst_27 {dimension_numbers = #tpu.dot_dimension_numbers<[1], [0], [0], [1], [0, 0, 1, 1], [], []>} : vector<8x32xf32>, vector<32x32xf32>, vector<8x32xf32> -> vector<8x32xf32>
    %c0_28 = arith.constant 0 : index
    %c0_29 = arith.constant 0 : index
    %30 = vector.load %arg11[%c0_28, %c0_29] : memref<1x32xf32, #tpu.memory_space<vmem>>, vector<1x32xf32>
    %31 = vector.broadcast %30 : vector<1x32xf32> to vector<8x32xf32>
    %32 = arith.addf %29, %31 : vector<8x32xf32>
    %cst_30 = arith.constant 0.000000e+00 : f32
    %33 = vector.broadcast %cst_30 : f32 to vector<8x32xf32>
    %34 = arith.maximumf %32, %33 : vector<8x32xf32>
    %c0_31 = arith.constant 0 : index
    %c0_32 = arith.constant 0 : index
    %35 = vector.load %arg12[%c0_31, %c0_32] : memref<32x16xf32, #tpu.memory_space<vmem>>, vector<32x16xf32>
    %cst_33 = arith.constant dense<0.000000e+00> : vector<8x16xf32>
    %36 = tpu.matmul %34, %35, %cst_33 {dimension_numbers = #tpu.dot_dimension_numbers<[1], [0], [0], [1], [0, 0, 1, 1], [], []>} : vector<8x32xf32>, vector<32x16xf32>, vector<8x16xf32> -> vector<8x16xf32>
    %c0_34 = arith.constant 0 : index
    %c0_35 = arith.constant 0 : index
    %37 = vector.load %arg13[%c0_34, %c0_35] : memref<1x16xf32, #tpu.memory_space<vmem>>, vector<1x16xf32>
    %38 = vector.broadcast %37 : vector<1x16xf32> to vector<8x16xf32>
    %39 = arith.addf %36, %38 : vector<8x16xf32>
    %c0_36 = arith.constant 0 : index
    %c0_37 = arith.constant 0 : index
    %40 = vector.load %arg15[%c0_36, %c0_37] : memref<8x16xf32, #tpu.memory_space<vmem>>, vector<8x16xf32>
    tpu.vector_store %arg15[%c0_36, %c0_37], %39 {strides = array<i32>} : memref<8x16xf32, #tpu.memory_space<vmem>>, vector<8x16xf32>,
    return
  }
  func.func @transform_0(%arg0: i32) -> (i32, i32) {
    %c0_i32 = arith.constant 0 : i32
    %c0_i32_0 = arith.constant 0 : i32
    return %arg0, %c0_i32 : i32, i32
  }
  func.func @transform_1(%arg0: i32) -> (i32, i32) {
    %c0_i32 = arith.constant 0 : i32
    %c0_i32_0 = arith.constant 0 : i32
    %c0_i32_1 = arith.constant 0 : i32
    return %c0_i32, %c0_i32_0 : i32, i32
  }
  func.func @transform_2(%arg0: i32) -> (i32, i32) {
    %c0_i32 = arith.constant 0 : i32
    %c0_i32_0 = arith.constant 0 : i32
    %c0_i32_1 = arith.constant 0 : i32
    return %c0_i32, %c0_i32_0 : i32, i32
  }
  func.func @transform_3(%arg0: i32) -> (i32, i32) {
    %c0_i32 = arith.constant 0 : i32
    %c0_i32_0 = arith.constant 0 : i32
    %c0_i32_1 = arith.constant 0 : i32
    return %c0_i32, %c0_i32_0 : i32, i32
  }
  func.func @transform_4(%arg0: i32) -> (i32, i32) {
    %c0_i32 = arith.constant 0 : i32
    %c0_i32_0 = arith.constant 0 : i32
    %c0_i32_1 = arith.constant 0 : i32
    return %c0_i32, %c0_i32_0 : i32, i32
  }
  func.func @transform_5(%arg0: i32) -> (i32, i32) {
    %c0_i32 = arith.constant 0 : i32
    %c0_i32_0 = arith.constant 0 : i32
    %c0_i32_1 = arith.constant 0 : i32
    return %c0_i32, %c0_i32_0 : i32, i32
  }
  func.func @transform_6(%arg0: i32) -> (i32, i32) {
    %c0_i32 = arith.constant 0 : i32
    %c0_i32_0 = arith.constant 0 : i32
    %c0_i32_1 = arith.constant 0 : i32
    return %c0_i32, %c0_i32_0 : i32, i32
  }
  func.func @transform_7(%arg0: i32) -> (i32, i32) {
    %c0_i32 = arith.constant 0 : i32
    %c0_i32_0 = arith.constant 0 : i32
    %c0_i32_1 = arith.constant 0 : i32
    return %c0_i32, %c0_i32_0 : i32, i32
  }
  func.func @transform_8(%arg0: i32) -> (i32, i32) {
    %c0_i32 = arith.constant 0 : i32
    %c0_i32_0 = arith.constant 0 : i32
    %c0_i32_1 = arith.constant 0 : i32
    return %c0_i32, %c0_i32_0 : i32, i32
  }
  func.func @transform_9(%arg0: i32) -> (i32, i32) {
    %c0_i32 = arith.constant 0 : i32
    %c0_i32_0 = arith.constant 0 : i32
    %c0_i32_1 = arith.constant 0 : i32
    return %c0_i32, %c0_i32_0 : i32, i32
  }
  func.func @transform_10(%arg0: i32) -> (i32, i32) {
    %c0_i32 = arith.constant 0 : i32
    %c0_i32_0 = arith.constant 0 : i32
    %c0_i32_1 = arith.constant 0 : i32
    return %c0_i32, %c0_i32_0 : i32, i32
  }
  func.func @transform_11(%arg0: i32) -> (i32, i32) {
    %c0_i32 = arith.constant 0 : i32
    %c0_i32_0 = arith.constant 0 : i32
    %c0_i32_1 = arith.constant 0 : i32
    return %c0_i32, %c0_i32_0 : i32, i32
  }
  func.func @transform_12(%arg0: i32) -> (i32, i32) {
    %c0_i32 = arith.constant 0 : i32
    %c0_i32_0 = arith.constant 0 : i32
    %c0_i32_1 = arith.constant 0 : i32
    return %c0_i32, %c0_i32_0 : i32, i32
  }
  func.func @transform_13(%arg0: i32) -> (i32, i32) {
    %c0_i32 = arith.constant 0 : i32
    %c0_i32_0 = arith.constant 0 : i32
    return %arg0, %c0_i32 : i32, i32
  }
  func.func @transform_14(%arg0: i32) -> (i32, i32) {
    %c0_i32 = arith.constant 0 : i32
    %c0_i32_0 = arith.constant 0 : i32
    return %arg0, %c0_i32 : i32, i32
  }
}

</mosaic_0001>

<bundles_post_ra>
// kernel: mlp_autoencoder_forward.1
= control target key start
LH: loop header
LB: loop body
LE: loop exit
PB: predicated region body
PF: predicated region fallthrough
CT: control target
= control target key end

     0   :  { %20 = vsyncpa [#allocation3], 0  ;;  %s711_s0 = inlined_call_operand.hbm [shape: f32[8,16], index: 0, kind: input, shape index: {}]   ;;  %s712_s1 = inlined_call_operand.vmem [shape: f32[16,32], index: 1, kind: input, shape index: {}]   ;;  %s713_s2 = inlined_call_operand.vmem [shape: f32[1,32], index: 2, kind: input, shape index: {}]   ;;  %s714_s3 = inlined_call_operand.vmem [shape: f32[32,32], index: 3, kind: input, shape index: {}]   ;;  %s715_s4 = inlined_call_operand.vmem [shape: f32[1,32], index: 4, kind: input, shape index: {}]   ;;  %s716_s5 = inlined_call_operand.vmem [shape: f32[32,8], index: 5, kind: input, shape index: {}]   ;;  %s717_s6 = inlined_call_operand.vmem [shape: f32[1,8], index: 6, kind: input, shape index: {}]   ;;  %s718_s7 = inlined_call_operand.hbm [shape: f32[8,32], index: 7, kind: input, shape index: {}]   ;;  %s719_s8 = inlined_call_operand.hbm [shape: f32[1,32], index: 8, kind: input, shape index: {}]   ;;  %s720_s9 = inlined_call_operand.vmem [shape: f32[32,32], index: 9, kind: input, shape index: {}]   ;;  %s721_s10 = inlined_call_operand.hbm [shape: f32[1,32], index: 10, kind: input, shape index: {}]   ;;  %s722_s11 = inlined_call_operand.vmem [shape: f32[32,16], index: 11, kind: input, shape index: {}]   ;;  %s723_s12 = inlined_call_operand.hbm [shape: f32[1,16], index: 12, kind: input, shape index: {}]   ;;  %s724_s13 = inlined_call_operand.hbm [shape: f32[8,8], index: 13, kind: output, shape index: {0}]   ;;  %s725_s14 = inlined_call_operand.hbm [shape: f32[8,16], index: 14, kind: output, shape index: {1}]  }
   0x1   :  { %21 = vsyncpa [#allocation6], 0 }
   0x2   :  { %22 = vsyncpa [#allocation9], 0 }
   0x3   :  { %23 = vsyncpa [#allocation4], 0  ;;  %s53_s15 = sshll.u32 %s718_s7, 4  ;;  %s54_s15 = int_to_ptr.hbm [resolvable:$true] %s53_s15 }
   0x4   :  { %24 = vsyncpa [#allocation13], 0  ;;  %s539_s16 = smov [#allocation5]   ;;  %s77_s20 = sshll.u32 %s721_s10, 4  ;;  %s78_s20 = int_to_ptr.hbm [resolvable:$true] %s77_s20 }
   0x5   :  { %s55_s17 = sshll.u32 %s539_s16, 4  ;;  %s540_s21 = smov [#allocation8]   ;;  %s56_s17 = int_to_ptr.vmem [resolvable:$true] %s55_s17 }
   0x6   :  { %58 = dma.hbm_to_vmem [thread:$0]  %s54_s15, 128, %s56_s17, [#allocation6]  }
   0x7   :  { %s79_s22 = sshll.u32 %s540_s21, 4  ;;  %s30_s25 = sshll.u32 %s711_s0, 4  ;;  %s80_s22 = int_to_ptr.vmem [resolvable:$true] %s79_s22  ;;  %s31_s25 = int_to_ptr.hbm [resolvable:$true] %s30_s25 }
   0x8   :  { %82 = dma.hbm_to_vmem [thread:$0]  %s78_s20, 16, %s80_s22, [#allocation9]  }
   0x9   :  { %s64_s27 = sshll.u32 %s719_s8, 4  ;;  %s541_s28 = smov [#allocation2]   ;;  %s65_s27 = int_to_ptr.hbm [resolvable:$true] %s64_s27 }
   0xa   :  { %s32_s29 = sshll.u32 %s541_s28, 4  ;;  %s542_s10 = smov [#allocation7]   ;;  %s33_s29 = int_to_ptr.vmem [resolvable:$true] %s32_s29 }
   0xb   :  { %35 = dma.hbm_to_vmem [thread:$0]  %s31_s25, 128, %s33_s29, [#allocation3]  }
   0xc   :  { %s66_s30 = sshll.u32 %s542_s10, 4  ;;  %s90_s17 = sshll.u32 %s723_s12, 4  ;;  %s67_s30 = int_to_ptr.vmem [resolvable:$true] %s66_s30  ;;  %s91_s17 = int_to_ptr.hbm [resolvable:$true] %s90_s17 }
   0xd   :  { %69 = dma.hbm_to_vmem [thread:$0]  %s65_s27, 16, %s67_s30, [#allocation6]  }
   0xe   :  { %s543_s0 = smov [#allocation10]  }
   0xf   :  { %s92_s18 = sshll.u32 %s543_s0, 4  ;;  %s93_s18 = int_to_ptr.vmem [resolvable:$true] %s92_s18 }
  0x10   :  { %95 = dma.hbm_to_vmem [thread:$0]  %s91_s17, 16, %s93_s18, [#allocation9]  }
  0x11   :  { %529 = dma.done.wait [#allocation3], 128  }
  0x12   :  { %530 = vsyncadd [#allocation3], 4294967168 }
  0x13   :  { %531 = dma.done.wait [#allocation6], 144  }
  0x14   :  { %532 = vsyncadd [#allocation6], 4294967152 }
  0x15   :  { %533 = dma.done.wait [#allocation9], 32  }
  0x16   :  { %534 = vsyncadd [#allocation9], 4294967264  ;;  %v118_v0 = vld [vmem:[%s712_s1 + $0x8] sm:$0xff]  ;;  %v117_v1 = vld [vmem:[%s712_s1] sm:$0xff]  ;;  %vm123_vm0 = vcmask 130048   ;;  %vm156_vm1 = vcmask 261120  }
  0x17   :  { %141 = vmatpush.msra.mxu0 %v118_v0  ;;  %v116_v2 = vld [vmem:[#allocation2] sm:$0xff]  ;;  %v151_v3 = vld [vmem:[%s714_s3 + $0x18] sm:$0xff]  ;;  %v150_v4 = vld [vmem:[%s714_s3 + $0x10] sm:$0xff]  ;;  %vm212_vm2 = vcmask 64512   ;;  %s544_s29 = smov [#allocation11]   ;;  %s545_s16 = smov [#allocation12]  }
  0x18   :  { %172 = vmatpush.msra.mxu1 %v151_v3  ;;  %v149_v5 = vld [vmem:[%s714_s3 + $0x8] sm:$0xff]  ;;  %v148_v6 = vld [vmem:[%s714_s3] sm:$0xff]  ;;  %v184_v7 = vld [vmem:[%s716_s5 + $0x18] sm:$0xff]  ;;  %s312_s10 = sshll.u32 %s544_s29, 4  ;;  %s314_s3 = sshll.u32 %s724_s13, 4  ;;  %s313_s10 = int_to_ptr.vmem [resolvable:$true] %s312_s10  ;;  %s315_s3 = int_to_ptr.hbm [resolvable:$true] %s314_s3 }
  0x19   :  { %142 = vmatpush.msra.mxu0 %v117_v1  ;;  %204 = vmatpush.msra.mxu2 %v184_v7  ;;  %v355_v8 = vld [vmem:[%s713_s2] ss:$0 sm:$0xff]  ;;  %v183_v12 = vld [vmem:[%s716_s5 + $0x10] sm:$0xff]  ;;  %v182_v13 = vld [vmem:[%s716_s5 + $0x8] sm:$0xff]  ;;  %s323_s17 = sshll.u32 %s545_s16, 4  ;;  %s325_s2 = sshll.u32 %s725_s14, 4  ;;  %s324_s17 = int_to_ptr.vmem [resolvable:$true] %s323_s17  ;;  %s326_s2 = int_to_ptr.hbm [resolvable:$true] %s325_s2 }
  0x1a   :  { %342 = vmatmul.msk.f32.vlgmr.msra.gmra.mxu0 %vm123_vm0, %v116_v2  ;;  %173 = vmatpush.msra.mxu1 %v150_v4  ;;  %v181_v14 = vld [vmem:[%s716_s5] sm:$0xff]  ;;  %v214_v19 = vld [vmem:[#allocation5] sm:$0xff]  ;;  %v246_v20 = vld [vmem:[%s720_s9 + $0x18] sm:$0xff] }
  0x1b   :  { %205 = vmatpush.msra.mxu2 %v183_v12  ;;  %v356_v15 = vld [vmem:[%s715_s4] ss:$0 sm:$0xff]  ;;  %237 = vmatpush.msra.mxu3 %v214_v19  ;;  %v245_v21 = vld [vmem:[%s720_s9 + $0x10] sm:$0xff]  ;;  %v244_v25 = vld [vmem:[%s720_s9 + $0x8] sm:$0xff] }
  0x1c   :  { %174 = vmatpush.msra.mxu1 %v149_v5  ;;  %v357_v22 = vld [vmem:[%s717_s6] ss:$0 sm:$0xff]  ;;  %v278_v27 = vld [vmem:[%s722_s11 + $0x18] sm:$0xff]  ;;  %v277_v28 = vld [vmem:[%s722_s11 + $0x10] sm:$0xff] }
  0x1d   :  { %206 = vmatpush.msra.mxu2 %v182_v13  ;;  %266 = vmatpush.msrb.mxu3 %v246_v20  ;;  %v243_v26 = vld [vmem:[%s720_s9] sm:$0xff]  ;;  %v358_v29 = vld [vmem:[#allocation7] ss:$0 sm:$0xff]  ;;  %v276_v33 = vld [vmem:[%s722_s11 + $0x8] sm:$0xff] }
  0x1e   :  { %175 = vmatpush.msra.mxu1 %v148_v6  ;;  %298 = vmatpush.msrb.mxu0 %v278_v27  ;;  %v275_v34 = vld [vmem:[%s722_s11] sm:$0xff]  ;;  %v359_v35 = vld [vmem:[#allocation8] ss:$0 sm:$0xff]  ;;  %v360_v39 = vld [vmem:[#allocation10] ss:$0 sm:$0xff] }
  0x1f   :  { %207 = vmatpush.msra.mxu2 %v181_v14  ;;  %267 = vmatpush.msrb.mxu3 %v245_v21 }
  0x20   :  { %299 = vmatpush.msrb.mxu0 %v277_v28 }
  0x21   :  { %268 = vmatpush.msrb.mxu3 %v244_v25 }
  0x22   :  { %300 = vmatpush.msrb.mxu0 %v276_v33 }
  0x23   :  { %269 = vmatpush.msrb.mxu3 %v243_v26 }
  0x24   :  { %301 = vmatpush.msrb.mxu0 %v275_v34 }
  0x97   :  { %v144_v9 = vpop.f32.mrf.mxu0 }
  0x98   :  { %v145_v10 = vadd.f32 %v355_v8, %v144_v9 }
  0x9a   :  { %v147_v11 = vmax.f32 %v145_v10, 0.0 }
  0x9c   :  { %343 = vmatmul.msk.f32.vlgmr.msra.gmra.mxu1 %vm156_vm1, %v147_v11 }
 0x119   :  { %v177_v16 = vpop.f32.mrf.mxu1 }
 0x11a   :  { %v178_v17 = vadd.f32 %v356_v15, %v177_v16 }
 0x11c   :  { %v180_v18 = vmax.f32 %v178_v17, 0.0 }
 0x11e   :  { %344 = vmatmul.msk.f32.vlgmr.msra.gmra.mxu2 %vm156_vm1, %v180_v18 }
 0x1a1   :  { %v209_v23 = vpop.f32.mrf.mxu2 }
 0x1a2   :  { %v210_v24 = vadd.f32 %v357_v22, %v209_v23 }
 0x1a4   :  { %345 = vmatmul.msk.f32.vlgmr.msra.gmra.mxu3 %vm212_vm2, %v210_v24  ;;  %213 = vst.msk [vmem:[#allocation11] sm:$0xff] %vm212_vm2, %v210_v24 }
 0x1a5   :  { %317 = dma.vmem_to_hbm [thread:$0]  %s313_s10, 128, %s315_s3, [#allocation4]  }
 0x227   :  { %v239_v30 = vpop.f32.mrf.mxu3 }
 0x228   :  { %v240_v31 = vadd.f32 %v358_v29, %v239_v30 }
 0x22a   :  { %v242_v32 = vmax.f32 %v240_v31, 0.0 }
 0x22c   :  { %346 = vmatmul.msk.f32.vlgmr.msrb.gmra.mxu3 %vm156_vm1, %v242_v32 }
 0x2af   :  { %v271_v36 = vpop.f32.mrf.mxu3 }
 0x2b0   :  { %v272_v37 = vadd.f32 %v359_v35, %v271_v36 }
 0x2b2   :  { %v274_v38 = vmax.f32 %v272_v37, 0.0 }
 0x2b4   :  { %347 = vmatmul.msk.f32.vlgmr.msrb.gmra.mxu0 %vm156_vm1, %v274_v38 }
 0x331   :  { %v303_v40 = vpop.f32.mrf.mxu0 }
 0x332   :  { %v304_v41 = vadd.f32 %v360_v39, %v303_v40 }
 0x334   :  { %306 = vst.msk [vmem:[#allocation12] sm:$0xff] %vm123_vm0, %v304_v41 }
 0x335   :  { %328 = dma.vmem_to_hbm [thread:$0]  %s324_s17, 128, %s326_s2, [#allocation13]  }
 0x336   :  { %535 = dma.done.wait [#allocation4], 128  }
 0x337   :  { %536 = vsyncadd [#allocation4], 4294967168 }
 0x338   :  { %537 = dma.done.wait [#allocation13], 128  }
 0x339   :  { %538 = vsyncadd [#allocation13], 4294967168 }
 0x33a   :  { %337 = vsyncpa [#allocation3], 1 }
 0x33b   :  { %338 = vsyncpa [#allocation6], 1 }
 0x33c   :  { %339 = vsyncpa [#allocation9], 1 }
 0x33d   :  { %340 = vsyncpa [#allocation4], 1 }
 0x33e   :  { %341 = vsyncpa [#allocation13], 1 }

</bundles_post_ra>
